<compile_context>
chip_gen: v7x
topology: tpu7x:2x2x1
jax: 0.10.0
libtpu: 0.0.40
codegen_flags: <defaults>
</compile_context>

<pallas_src>
import jax
import jax.numpy as jnp
from jax.experimental import pallas as pl
from jax.experimental.pallas import tpu as pltpu

LANE = 128
SUBLANE = 8


def _round_up(x, m):
    return ((x + m - 1) // m) * m


def _cdiv(a, b):
    return (a + b - 1) // b


def mlp_kernel(task_idx_ref,          # scalar-prefetch (SMEM), consumed by index_maps only
               x_ref, w1_ref, b1_ref, w2_ref, b2_ref, wt_ref, bt_ref,
               o_ref):
    del task_idx_ref
    cdt = x_ref.dtype  # compute dtype of matmul operands (bf16 or f32)
    # shared layer 1: Linear (f32 accumulation) + bias/ReLU in f32 (Dropout == identity)
    h1 = jnp.dot(x_ref[...], w1_ref[...],
                 preferred_element_type=jnp.float32) + b1_ref[...]
    h1 = jnp.maximum(h1, 0.0).astype(cdt)
    # shared layer 2
    h2 = jnp.dot(h1, w2_ref[...],
                 preferred_element_type=jnp.float32) + b2_ref[...]
    h2 = jnp.maximum(h2, 0.0).astype(cdt)
    # task-specific head (block already selected by index_map via task_idx)
    logits = jnp.dot(h2, wt_ref[...],
                     preferred_element_type=jnp.float32) + bt_ref[...]
    o_ref[...] = logits.astype(o_ref.dtype)


def pad_params(params, compute_dtype=jnp.bfloat16):
    """Prepare stored (already transposed, (in,out)-shaped) weights for the kernel.

    Zero padding is exact: padded input columns hit zero weight rows, padded
    hidden units get bias 0 -> ReLU(0) = 0, padded output columns are sliced
    off by the caller.  Only the output dim is padded to 128 (lane-dense
    output stores); D / H1 / H2 are padded just to multiples of 8 so the MXU
    does not multiply zeros and weight HBM bytes are not inflated.  Matmul
    operands are cast to `compute_dtype`; biases stay f32 (f32 bias-add/ReLU).
    """
    w1, b1, w2, b2, wt, bt = params
    D, H1 = w1.shape
    H2 = w2.shape[1]
    O = wt.shape[2]
    Dp = _round_up(D, SUBLANE)
    H1p = _round_up(H1, SUBLANE)
    H2p = _round_up(H2, SUBLANE)
    Op = _round_up(O, LANE)
    w1p = jnp.pad(w1, ((0, Dp - D), (0, H1p - H1))).astype(compute_dtype)
    b1p = jnp.pad(b1, ((0, 0), (0, H1p - H1))).astype(jnp.float32)
    w2p = jnp.pad(w2, ((0, H1p - H1), (0, H2p - H2))).astype(compute_dtype)
    b2p = jnp.pad(b2, ((0, 0), (0, H2p - H2))).astype(jnp.float32)
    wtp = jnp.pad(wt, ((0, 0), (0, H2p - H2), (0, Op - O))).astype(compute_dtype)
    btp = jnp.pad(bt, ((0, 0), (0, 0), (0, Op - O))).astype(jnp.float32)
    return (w1p, b1p, w2p, b2p, wtp, btp)


def _vmem_capacity_bytes():
    try:
        cap = int(getattr(pltpu.get_tpu_info(), "vmem_capacity_bytes"))
        if cap > 0:
            return cap
    except Exception:
        pass
    return 64 * 1024 * 1024  # conservative default (v7x per-TC VMEM)


def _choose_tm(B, vmem_capacity_bytes):
    """Batch tile size: multiple of 8, near-equal tiles, >=2 tiles when B > 8."""
    # Larger per-tile cap on 128-MiB-VMEM v5e/v6e; 256 on 64-MiB v7x.
    max_tm = 512 if vmem_capacity_bytes >= 96 * 1024 * 1024 else 256
    n_tiles = _cdiv(B, max_tm)
    # >=2 tiles so dimension_semantics=("parallel",) can feed both v7x
    # TensorCores; costless on 1-TC chips.  Keep a single 8-row tile for B<=8.
    if n_tiles == 1 and B > SUBLANE:
        n_tiles = 2
    return _round_up(_cdiv(B, n_tiles), SUBLANE)


def net_forward(x, padded_params, task_idx, out_dim):
    """x: (B, input_dim) f32. padded_params: output of pad_params.
    task_idx: int / int32 scalar. out_dim: logical output dim. -> (B, out_dim) f32."""
    w1, b1, w2, b2, wt, bt = padded_params
    num_tasks = wt.shape[0]
    B, D = x.shape
    Dp, H1p = w1.shape
    H2p = w2.shape[1]
    Op = wt.shape[2]

    vmem_cap = _vmem_capacity_bytes()
    TM = _choose_tm(B, vmem_cap)
    Bp = _round_up(B, TM)

    cdt = w1.dtype  # compute dtype (bf16 by default)
    xp = x.astype(cdt)
    if (Bp, Dp) != (B, D):
        xp = jnp.pad(xp, ((0, Bp - B), (0, Dp - D)))

    # Clamp so an out-of-range task index can never select an OOB head block.
    task_idx_arr = jnp.clip(jnp.asarray(task_idx, dtype=jnp.int32),
                            0, num_tasks - 1).reshape(1)

    grid = (Bp // TM,)

    grid_spec = pltpu.PrefetchScalarGridSpec(
        num_scalar_prefetch=1,
        grid=grid,
        in_specs=[
            pl.BlockSpec((TM, Dp),        lambda i, t: (i, 0)),
            # constant index_maps: weights/biases stay VMEM-resident across B-tiles
            pl.BlockSpec((Dp, H1p),       lambda i, t: (0, 0)),
            pl.BlockSpec((1, H1p),        lambda i, t: (0, 0)),
            pl.BlockSpec((H1p, H2p),      lambda i, t: (0, 0)),
            pl.BlockSpec((1, H2p),        lambda i, t: (0, 0)),
            # task-stacked head weight/bias: first axis indexed by task_idx, squeezed
            pl.BlockSpec((None, H2p, Op), lambda i, t: (t[0], 0, 0)),
            pl.BlockSpec((None, 1, Op),   lambda i, t: (t[0], 0, 0)),
        ],
        out_specs=pl.BlockSpec((TM, Op), lambda i, t: (i, 0)),
    )

    wsz = jnp.dtype(cdt).itemsize
    osz = 4  # f32 biases / output
    # per-step VMEM footprint: double-buffered x/out tiles + (double-buffered)
    # weights/biases + live f32 intermediates between the three matmuls
    vmem_est = (
        2 * TM * Dp * wsz
        + 2 * TM * Op * osz
        + 2 * (Dp * H1p + H1p * H2p + H2p * Op) * wsz
        + 2 * (H1p + H2p + Op) * osz
        + 3 * TM * max(H1p, H2p, Op) * 4
    )
    # leave ~25% physical-VMEM headroom for Mosaic internal scratch:
    # ~48 MiB cap on v7x (64 MiB/TC), ~96 MiB on v5e/v6e (128 MiB)
    vmem_limit = min(int(vmem_cap * 3 // 4),
                     max(32 * 1024 * 1024, int(vmem_est * 3 // 2)))

    cost = pl.CostEstimate(
        flops=2 * Bp * (Dp * H1p + H1p * H2p + H2p * Op),
        transcendentals=0,
        bytes_accessed=(wsz * (Bp * Dp + Dp * H1p + H1p * H2p + H2p * Op)
                        + osz * (H1p + H2p + Op + Bp * Op)),
    )

    out_padded = pl.pallas_call(
        mlp_kernel,
        grid_spec=grid_spec,
        out_shape=jax.ShapeDtypeStruct((Bp, Op), jnp.float32),
        compiler_params=pltpu.CompilerParams(
            # independent batch tiles -> let v7x's 2 TensorCores split them
            dimension_semantics=("parallel",),
            vmem_limit_bytes=vmem_limit,
        ),
        cost_estimate=cost,
    )(task_idx_arr, xp, w1, b1, w2, b2, wt, bt)

    return out_padded[:B, :out_dim]


def init_params(key, input_dim, hidden1_dim, hidden2_dim, output_dim, num_tasks):
    """Deterministic synthetic params (PyTorch-like uniform fan-in init),
    stored transposed as (in_dim, out_dim) so the kernel computes x @ W + b."""
    ks = jax.random.split(key, 6)

    def lin(kw, kb, fan_in, fan_out):
        bound = 1.0 / jnp.sqrt(fan_in)
        w = jax.random.uniform(kw, (fan_in, fan_out), jnp.float32, -bound, bound)
        b = jax.random.uniform(kb, (1, fan_out), jnp.float32, -bound, bound)
        return w, b

    w1, b1 = lin(ks[0], ks[1], input_dim, hidden1_dim)
    w2, b2 = lin(ks[2], ks[3], hidden1_dim, hidden2_dim)
    bound = 1.0 / jnp.sqrt(hidden2_dim)
    wt = jax.random.uniform(ks[4], (num_tasks, hidden2_dim, output_dim),
                            jnp.float32, -bound, bound)
    bt = jax.random.uniform(ks[5], (num_tasks, 1, output_dim),
                            jnp.float32, -bound, bound)
    return w1, b1, w2, b2, wt, bt


def reference_forward(x, params, task_idx):
    w1, b1, w2, b2, wt, bt = params
    h1 = jnp.maximum(x @ w1 + b1, 0.0)
    h2 = jnp.maximum(h1 @ w2 + b2, 0.0)
    return h2 @ wt[task_idx] + bt[task_idx]


if __name__ == "__main__":
    B, INPUT_DIM, H1, H2, OUT_DIM, NUM_TASKS = 8, 32, 64, 32, 16, 3
    TASK_IDX = 1

    key = jax.random.PRNGKey(0)
    kx, kp = jax.random.split(key)
    x = jax.random.normal(kx, (B, INPUT_DIM), dtype=jnp.float32)
    params = init_params(kp, INPUT_DIM, H1, H2, OUT_DIM, NUM_TASKS)

    fwd = jax.jit(net_forward, static_argnames=("out_dim",))
    ref = reference_forward(x, params, TASK_IDX)

    # f32 compute path: validate tightly against the pure-JAX f32 reference.
    params_f32 = pad_params(params, compute_dtype=jnp.float32)
    out_f32 = jax.block_until_ready(fwd(x, params_f32, jnp.int32(TASK_IDX), OUT_DIM))
    assert out_f32.shape == (B, OUT_DIM)
    assert jnp.allclose(out_f32, ref, atol=1e-4, rtol=1e-4), "f32 mismatch vs reference"

    # bf16 compute path (default for perf): loose tolerance vs the f32 reference.
    params_bf16 = pad_params(params)  # bfloat16 by default
    out_bf16 = jax.block_until_ready(fwd(x, params_bf16, jnp.int32(TASK_IDX), OUT_DIM))
    assert out_bf16.shape == (B, OUT_DIM)
    assert jnp.allclose(out_bf16, ref, atol=5e-2, rtol=5e-2), "bf16 mismatch vs reference"

    print("KERNEL_OK")
</pallas_src>

<mosaic_0001>
module attributes {stable_mosaic.version = 11 : i64} {
  func.func @mlp_kernel(%arg0: i32, %arg1: memref<1xi32, #tpu.memory_space<smem>>, %arg2: memref<8x32xf32, #tpu.memory_space<vmem>>, %arg3: memref<32x64xf32, #tpu.memory_space<vmem>>, %arg4: memref<1x64xf32, #tpu.memory_space<vmem>>, %arg5: memref<64x32xf32, #tpu.memory_space<vmem>>, %arg6: memref<1x32xf32, #tpu.memory_space<vmem>>, %arg7: memref<1x32x128xf32, #tpu.memory_space<vmem>>, %arg8: memref<1x1x128xf32, #tpu.memory_space<vmem>>, %arg9: memref<8x128xf32, #tpu.memory_space<vmem>>) attributes {dimension_semantics = [#tpu.dimension_semantics<parallel>], iteration_bounds = array<i64: 1>, scalar_prefetch = 1 : i64, scratch_operands = 0 : i64, tpu.core_type = #tpu.core_type<tc>, window_params = [{transform_indices = @transform_0, window_bounds = array<i64: 8, 32>}, {pipeline_mode = #tpu.pipeline_mode<synchronous>, transform_indices = @transform_1, window_bounds = array<i64: 32, 64>}, {pipeline_mode = #tpu.pipeline_mode<synchronous>, transform_indices = @transform_2, window_bounds = array<i64: 1, 64>}, {pipeline_mode = #tpu.pipeline_mode<synchronous>, transform_indices = @transform_3, window_bounds = array<i64: 64, 32>}, {pipeline_mode = #tpu.pipeline_mode<synchronous>, transform_indices = @transform_4, window_bounds = array<i64: 1, 32>}, {transform_indices = @transform_5, window_bounds = array<i64: 1, 32, 128>}, {transform_indices = @transform_6, window_bounds = array<i64: 1, 1, 128>}, {transform_indices = @transform_7, window_bounds = array<i64: 8, 128>}]} {
    %c0 = arith.constant 0 : index
    %c0_0 = arith.constant 0 : index
    %0 = vector.load %arg2[%c0, %c0_0] : memref<8x32xf32, #tpu.memory_space<vmem>>, vector<8x32xf32>
    %c0_1 = arith.constant 0 : index
    %c0_2 = arith.constant 0 : index
    %1 = vector.load %arg3[%c0_1, %c0_2] : memref<32x64xf32, #tpu.memory_space<vmem>>, vector<32x64xf32>
    %cst = arith.constant dense<0.000000e+00> : vector<8x64xf32>
    %2 = tpu.matmul %0, %1, %cst {dimension_numbers = #tpu.dot_dimension_numbers<[1], [0], [0], [1], [0, 0, 1, 1], [], []>} : vector<8x32xf32>, vector<32x64xf32>, vector<8x64xf32> -> vector<8x64xf32>
    %c0_3 = arith.constant 0 : index
    %c0_4 = arith.constant 0 : index
    %3 = vector.load %arg4[%c0_3, %c0_4] : memref<1x64xf32, #tpu.memory_space<vmem>>, vector<1x64xf32>
    %4 = vector.broadcast %3 : vector<1x64xf32> to vector<8x64xf32>
    %5 = arith.addf %2, %4 : vector<8x64xf32>
    %cst_5 = arith.constant 0.000000e+00 : f32
    %6 = vector.broadcast %cst_5 : f32 to vector<8x64xf32>
    %7 = arith.maximumf %5, %6 : vector<8x64xf32>
    %c0_6 = arith.constant 0 : index
    %c0_7 = arith.constant 0 : index
    %8 = vector.load %arg5[%c0_6, %c0_7] : memref<64x32xf32, #tpu.memory_space<vmem>>, vector<64x32xf32>
    %cst_8 = arith.constant dense<0.000000e+00> : vector<8x32xf32>
    %9 = tpu.matmul %7, %8, %cst_8 {dimension_numbers = #tpu.dot_dimension_numbers<[1], [0], [0], [1], [0, 0, 1, 1], [], []>} : vector<8x64xf32>, vector<64x32xf32>, vector<8x32xf32> -> vector<8x32xf32>
    %c0_9 = arith.constant 0 : index
    %c0_10 = arith.constant 0 : index
    %10 = vector.load %arg6[%c0_9, %c0_10] : memref<1x32xf32, #tpu.memory_space<vmem>>, vector<1x32xf32>
    %11 = vector.broadcast %10 : vector<1x32xf32> to vector<8x32xf32>
    %12 = arith.addf %9, %11 : vector<8x32xf32>
    %cst_11 = arith.constant 0.000000e+00 : f32
    %13 = vector.broadcast %cst_11 : f32 to vector<8x32xf32>
    %14 = arith.maximumf %12, %13 : vector<8x32xf32>
    %c0_12 = arith.constant 0 : index
    %c0_13 = arith.constant 0 : index
    %c0_14 = arith.constant 0 : index
    %15 = vector.load %arg7[%c0_12, %c0_13, %c0_14] : memref<1x32x128xf32, #tpu.memory_space<vmem>>, vector<1x32x128xf32>
    %16 = vector.shape_cast %15 : vector<1x32x128xf32> to vector<32x128xf32>
    %cst_15 = arith.constant dense<0.000000e+00> : vector<8x128xf32>
    %17 = tpu.matmul %14, %16, %cst_15 {dimension_numbers = #tpu.dot_dimension_numbers<[1], [0], [0], [1], [0, 0, 1, 1], [], []>} : vector<8x32xf32>, vector<32x128xf32>, vector<8x128xf32> -> vector<8x128xf32>
    %c0_16 = arith.constant 0 : index
    %c0_17 = arith.constant 0 : index
    %c0_18 = arith.constant 0 : index
    %18 = vector.load %arg8[%c0_16, %c0_17, %c0_18] : memref<1x1x128xf32, #tpu.memory_space<vmem>>, vector<1x1x128xf32>
    %19 = vector.shape_cast %18 : vector<1x1x128xf32> to vector<1x128xf32>
    %20 = vector.broadcast %19 : vector<1x128xf32> to vector<8x128xf32>
    %21 = arith.addf %17, %20 : vector<8x128xf32>
    %c0_19 = arith.constant 0 : index
    %c0_20 = arith.constant 0 : index
    %22 = vector.load %arg9[%c0_19, %c0_20] : memref<8x128xf32, #tpu.memory_space<vmem>>, vector<8x128xf32>
    tpu.vector_store %arg9[%c0_19, %c0_20], %21 {strides = array<i32>} : memref<8x128xf32, #tpu.memory_space<vmem>>, vector<8x128xf32>,
    return
  }
  func.func @transform_0(%arg0: i32, %arg1: memref<1xi32, #tpu.memory_space<smem>>) -> (i32, i32) {
    %c0_i32 = arith.constant 0 : i32
    %c0_i32_0 = arith.constant 0 : i32
    return %arg0, %c0_i32 : i32, i32
  }
  func.func @transform_1(%arg0: i32, %arg1: memref<1xi32, #tpu.memory_space<smem>>) -> (i32, i32) {
    %c0_i32 = arith.constant 0 : i32
    %c0_i32_0 = arith.constant 0 : i32
    %c0_i32_1 = arith.constant 0 : i32
    return %c0_i32, %c0_i32_0 : i32, i32
  }
  func.func @transform_2(%arg0: i32, %arg1: memref<1xi32, #tpu.memory_space<smem>>) -> (i32, i32) {
    %c0_i32 = arith.constant 0 : i32
    %c0_i32_0 = arith.constant 0 : i32
    %c0_i32_1 = arith.constant 0 : i32
    return %c0_i32, %c0_i32_0 : i32, i32
  }
  func.func @transform_3(%arg0: i32, %arg1: memref<1xi32, #tpu.memory_space<smem>>) -> (i32, i32) {
    %c0_i32 = arith.constant 0 : i32
    %c0_i32_0 = arith.constant 0 : i32
    %c0_i32_1 = arith.constant 0 : i32
    return %c0_i32, %c0_i32_0 : i32, i32
  }
  func.func @transform_4(%arg0: i32, %arg1: memref<1xi32, #tpu.memory_space<smem>>) -> (i32, i32) {
    %c0_i32 = arith.constant 0 : i32
    %c0_i32_0 = arith.constant 0 : i32
    %c0_i32_1 = arith.constant 0 : i32
    return %c0_i32, %c0_i32_0 : i32, i32
  }
  func.func @transform_5(%arg0: i32, %arg1: memref<1xi32, #tpu.memory_space<smem>>) -> (i32, i32, i32) {
    %c0 = arith.constant 0 : index
    %0 = memref.load %arg1[%c0] : memref<1xi32, #tpu.memory_space<smem>>
    %c0_i32 = arith.constant 0 : i32
    %c0_i32_0 = arith.constant 0 : i32
    %c0_i32_1 = arith.constant 0 : i32
    return %0, %c0_i32, %c0_i32_0 : i32, i32, i32
  }
  func.func @transform_6(%arg0: i32, %arg1: memref<1xi32, #tpu.memory_space<smem>>) -> (i32, i32, i32) {
    %c0 = arith.constant 0 : index
    %0 = memref.load %arg1[%c0] : memref<1xi32, #tpu.memory_space<smem>>
    %c0_i32 = arith.constant 0 : i32
    %c0_i32_0 = arith.constant 0 : i32
    %c0_i32_1 = arith.constant 0 : i32
    return %0, %c0_i32, %c0_i32_0 : i32, i32, i32
  }
  func.func @transform_7(%arg0: i32, %arg1: memref<1xi32, #tpu.memory_space<smem>>) -> (i32, i32) {
    %c0_i32 = arith.constant 0 : i32
    %c0_i32_0 = arith.constant 0 : i32
    return %arg0, %c0_i32 : i32, i32
  }
}

</mosaic_0001>

<bundles_post_ra>
// kernel: net_forward.1
= control target key start
LH: loop header
LB: loop body
LE: loop exit
PB: predicated region body
PF: predicated region fallthrough
CT: control target
= control target key end

     0   :  { %14 = vsyncpa [#allocation5], 0  ;;  %s640_s0 = inlined_call_operand.<no memory space> [shape: s32[1], index: 0, kind: input, shape index: {}]   ;;  %s641_s1 = inlined_call_operand.hbm [shape: f32[8,32], index: 1, kind: input, shape index: {}]   ;;  %s642_s2 = inlined_call_operand.vmem [shape: f32[32,64], index: 2, kind: input, shape index: {}]   ;;  %s643_s3 = inlined_call_operand.vmem [shape: f32[1,64], index: 3, kind: input, shape index: {}]   ;;  %s644_s4 = inlined_call_operand.vmem [shape: f32[64,32], index: 4, kind: input, shape index: {}]   ;;  %s645_s5 = inlined_call_operand.vmem [shape: f32[1,32], index: 5, kind: input, shape index: {}]   ;;  %s646_s6 = inlined_call_operand.vmem [shape: f32[3,32,128], index: 6, kind: input, shape index: {}]   ;;  %s647_s7 = inlined_call_operand.vmem [shape: f32[3,1,128], index: 7, kind: input, shape index: {}]   ;;  %s648_s8 = inlined_call_operand.hbm [shape: f32[8,128], index: 8, kind: output, shape index: {}]  }
   0x1   :  { %15 = vsyncpa [#allocation6], 0  ;;  %s507_s27 = smov [#allocation4]   ;;  %s459_s9 = scalar_lea.hbm %s641_s1, 128 }
   0x2   :  { %s22_s28 = sshll.u32 %s507_s27, 4  ;;  %p460_p0 = scmp.ne.s32.totalorder %s641_s1, %s459_s9  ;;  %s23_s28 = int_to_ptr.vmem [resolvable:$true] %s22_s28 }
   0x3   :  { %p463_p1 = scmp.lt.u32.totalorder %s459_s9, %s641_s1 }
   0x5   :  { %p465_p2 = pnand %p463_p1, %p460_p0 }
   0x7   :  { %468 = shalt.err (!%p465_p2)
}
   0x8   :  { %s469_s14 = scalar_lea.vmem %s23_s28, 128  ;;  %p474_p4 = scmp.lt.s32.totalorder %s23_s28, %s23_s28 }
   0x9   :  { %p470_p3 = scmp.ne.s32.totalorder %s23_s28, %s469_s14  ;;  %p475_p5 = scmp.lt.s32.totalorder %s469_s14, %s469_s14 }
   0xb   :  { %p476_p6 = por %p475_p5, %p474_p4 }
   0xd   :  { %p477_p7 = pnand %p476_p6, %p470_p3 }
   0xf   :  { %480 = shalt.err (!%p477_p7)
}
  0x10   :  { %25 = dma.hbm_to_vmem [thread:$0]  %s641_s1, 128, %s23_s28, [#allocation5]  }
  0x11   :  { %503 = dma.done.wait [#allocation5], 128  }
  0x12   :  { %504 = vsyncadd [#allocation5], 4294967168  ;;  %v508_v0 = vmov 0.0|0.0   ;;  %vm509_vm0 = vmmov 0   ;;  %v510_v1 = vmov 0.0   ;;  %v76_v2 = vld [vmem:[%s642_s2] sm:$0xff] }
  0x13   :  { %430 = vmatprep.subr.bf16.mxu0 %v508_v0  ;;  %397 = vmatprep.mubr.msk.f32.mxu0 %vm509_vm0, %v510_v1  ;;  %v77_v3 = vld [vmem:[%s642_s2 + $0x8] sm:$0xff]  ;;  %v78_v4 = vld [vmem:[%s642_s2 + $0x10] sm:$0xff]  ;;  %v79_v6 = vld [vmem:[%s642_s2 + $0x18] sm:$0xff]  ;;  %vm87_vm1 = vcmask 261120   ;;  %p64_p8 = scmp.lt.s32.totalorder %s640_s0, 2  ;;  %vm177_vm2 = vcmask 523264  }
  0x14   :  { %436 = vmatprep.subr.bf16.mxu1 %v508_v0  ;;  %416 = vmatprep.mubr.msk.f32.mxu1 %vm509_vm0, %v510_v1  ;;  %v431_v5 = vpack.c.bf16 %v77_v3, %v76_v2  ;;  %v162_v7 = vld [vmem:[%s644_s4] sm:$0xff]  ;;  %v163_v8 = vld [vmem:[%s644_s4 + $0x8] sm:$0xff]  ;;  %v164_v9 = vld [vmem:[%s644_s4 + $0x10] sm:$0xff]  ;;  %v434_v11 = vpack.c.bf16 %v79_v6, %v78_v4  ;;  %s511_s28 = smov [#allocation7]  }
  0x15   :  { %v165_v10 = vld [vmem:[%s644_s4 + $0x18] sm:$0xff]  ;;  %v437_v12 = vpack.c.bf16 %v163_v8, %v162_v7  ;;  %v166_v14 = vld [vmem:[%s644_s4 + $0x20] sm:$0xff]  ;;  %v167_v15 = vld [vmem:[%s644_s4 + $0x28] sm:$0xff]  ;;  %s650_s0 = smov (!%p64_p8, %s640_s0), 2  ;;  %s343_s29 = sshll.u32 %s511_s28, 4  ;;  %s344_s29 = int_to_ptr.vmem [resolvable:$true] %s343_s29 }
  0x16   :  { %432 = vmatpush3.bf16.msra.mxu0 %v431_v5  ;;  %v440_v13 = vpack.c.bf16 %v165_v10, %v164_v9  ;;  %v75_v16 = vld [vmem:[#allocation4] sm:$0xff]  ;;  %v443_v17 = vpack.c.bf16 %v167_v15, %v166_v14  ;;  %v168_v18 = vld [vmem:[%s644_s4 + $0x30] sm:$0xff]  ;;  %v169_v19 = vld [vmem:[%s644_s4 + $0x38] sm:$0xff]  ;;  %s369_s1 = sshll.u32 %s650_s0, 5  ;;  %s73_s27 = scalar_lea.vmem %s647_s7, %s650_s0 }
  0x17   :  { %433 = vmatprep.subr.bf16.mxu0 %v508_v0  ;;  %438 = vmatpush3.bf16.msra.mxu1 %v437_v12  ;;  %v446_v20 = vpack.c.bf16 %v169_v19, %v168_v18  ;;  %s68_s23 = scalar_lea.vmem %s646_s6, %s369_s1  ;;  %v363_v24 = vld [vmem:[%s643_s3] ss:$0 sm:$0xff]  ;;  %s481_s30 = scalar_lea.vmem %s344_s29, 128 }
  0x18   :  { %439 = vmatprep.subr.bf16.mxu1 %v508_v0  ;;  %v252_v21 = vld [vmem:[%s68_s23] sm:$0xff]  ;;  %v253_v22 = vld [vmem:[%s68_s23 + $0x8] sm:$0xff]  ;;  %v254_v29 = vld [vmem:[%s68_s23 + $0x10] sm:$0xff]  ;;  %p482_p9 = scmp.ne.s32.totalorder %s344_s29, %s481_s30  ;;  %p486_p10 = scmp.lt.s32.totalorder %s344_s29, %s344_s29 }
  0x19   :  { %v449_v23 = vpack.c.bf16 %v253_v22, %v252_v21  ;;  %v255_v30 = vld [vmem:[%s68_s23 + $0x18] sm:$0xff]  ;;  %v365_v32 = vld [vmem:[%s645_s5] ss:$0 sm:$0xff]  ;;  %p487_p11 = scmp.lt.s32.totalorder %s481_s30, %s481_s30 }
  0x1a   :  { %435 = vmatpush3.bf16.msra.mxu0 %v434_v11  ;;  %v452_v31 = vpack.c.bf16 %v255_v30, %v254_v29  ;;  %v367_v37 = vld [vmem:[%s73_s27] ss:$0 sm:$0xff] }
  0x1b   :  { %448 = vmatprep.subr.bf16.mxu0 %v508_v0  ;;  %441 = vmatpush3.bf16.msra.mxu1 %v440_v13  ;;  %p488_p12 = por %p487_p11, %p486_p10 }
  0x1c   :  { %442 = vmatprep.subr.bf16.mxu1 %v508_v0 }
  0x1d   :  { %398 = vmatmul.mubr.msk.f32.vlgmr.msra.gmra.mrb[0].mxu0 %vm87_vm1, %v75_v16  ;;  %p489_p13 = pnand %p488_p12, %p482_p9 }
  0x1e   :  { %427 = vmatprep.mubr.msk.f32.mxu0 %vm509_vm0, %v510_v1  ;;  %450 = vmatpush3.bf16.msra.mxu0 %v449_v23 }
  0x1f   :  { %444 = vmatpush3.bf16.msra.mxu1 %v443_v17  ;;  %451 = vmatprep.subr.bf16.mxu0 %v508_v0 }
  0x20   :  { %445 = vmatprep.subr.bf16.mxu1 %v508_v0 }
  0x22   :  { %453 = vmatpush3.bf16.msra.mxu0 %v452_v31 }
  0x23   :  { %447 = vmatpush3.bf16.msra.mxu1 %v446_v20 }
  0xf0   :  { %v157_v25 = vpop.f32.mrb[0].mxu0 }
  0xf1   :  { %v158_v26 = vadd.f32 %v363_v24, %v157_v25  ;;  %v399_v27 = vpop.f32.mrb[1].mxu0 }
  0xf3   :  { %v161_v28 = vmax.f32 %v158_v26, 0.0 }
  0xf5   :  { %417 = vmatmul.mubr.msk.f32.vlgmr.msra.gmra.mrb[0].mxu1 %vm177_vm2, %v161_v28 }
 0x1c8   :  { %v247_v33 = vpop.f32.mrb[0].mxu1 }
 0x1c9   :  { %v248_v34 = vadd.f32 %v365_v32, %v247_v33  ;;  %v418_v35 = vpop.f32.mrb[1].mxu1 }
 0x1cb   :  { %v251_v36 = vmax.f32 %v248_v34, 0.0 }
 0x1cd   :  { %428 = vmatmul.mubr.msk.f32.vlgmr.msra.gmra.mrb[2].mxu0 %vm87_vm1, %v251_v36 }
 0x2a0   :  { %v332_v38 = vpop.f32.mrb[2].mxu0 }
 0x2a1   :  { %v333_v39 = vadd.f32 %v367_v37, %v332_v38  ;;  %v429_v40 = vpop.f32.mrb[3].mxu0 }
 0x2a3   :  { %336 = vst [vmem:[#allocation7] sm:$0xff] %v333_v39 }
 0x2a4   :  { %492 = shalt.err (!%p489_p13)
}
 0x2a5   :  { %s493_s2 = scalar_lea.hbm %s648_s8, 128 }
 0x2a6   :  { %p494_p0 = scmp.ne.s32.totalorder %s648_s8, %s493_s2  ;;  %p497_p1 = scmp.lt.u32.totalorder %s493_s2, %s648_s8 }
 0x2a8   :  { %p499_p2 = pnand %p497_p1, %p494_p0 }
 0x2aa   :  { %502 = shalt.err (!%p499_p2)
}
 0x2ab   :  { %346 = dma.vmem_to_hbm [thread:$0]  %s344_s29, 128, %s648_s8, [#allocation6]  }
 0x2ac   :  { %505 = dma.done.wait [#allocation6], 128  }
 0x2ad   :  { %506 = vsyncadd [#allocation6], 4294967168 }
 0x2ae   :  { %350 = vsyncpa [#allocation5], 1 }
 0x2af   :  { %351 = vsyncpa [#allocation6], 1 }

</bundles_post_ra>
